<compile_context>
chip_gen: v7x
topology: tpu7x:2x2x1
jax: 0.10.0
libtpu: 0.0.40
codegen_flags: <defaults>
</compile_context>

<pallas_src>
import functools

import jax
import jax.numpy as jnp
from jax.experimental import pallas as pl
from jax.experimental.pallas import tpu as pltpu


# ----------------------------------------------------------------------------
# helpers
# ----------------------------------------------------------------------------
def _round_up(x, m):
    return (x + m - 1) // m * m


def _pick_row_block(rows, max_block):
    """Largest row tile <= max_block, but keep >=2 grid programs when possible
    so v7x's two TensorCores both get work (neutral on v5e/v6e)."""
    bm = min(max_block, _round_up(rows, 8))
    if rows > 8 and pl.cdiv(rows, bm) < 2:
        bm = max(8, _round_up(pl.cdiv(rows, 2), 8))
    return bm


def _pick_n_block(dout, max_block=512):
    """Output-feature tile: 512/256 (128-aligned) when they divide Dout,
    otherwise the full width as a single block."""
    for tn in (max_block, 256):
        if dout > tn and dout % tn == 0:
            return tn
    return dout


_VMEM_LIMIT = 48 * 1024 * 1024  # explicit budget; safe on v7x (64 MiB phys)


# ----------------------------------------------------------------------------
# Pallas kernels
# ----------------------------------------------------------------------------
def _ln_linear_kernel(x_ref, g_ref, b_ref, w_ref, bias_ref, o_ref, y_ref, *, eps):
    """Fused LayerNorm(last axis) -> bf16 Linear, N-tiled over the output dim.

    Grid = (row_tiles, n_tiles); n is innermost ("arbitrary").  The normalized
    activation is computed once per row tile (n == 0), cached in the bf16 VMEM
    scratch y_ref, and reused for every weight N-tile.

      x_ref: (bm, D)   g_ref/b_ref: (1, D) f32
      w_ref: (D, tn) bf16   bias_ref: (1, tn) f32
      o_ref: (bm, tn)       y_ref: (bm, D) bf16 scratch
    """
    @pl.when(pl.program_id(1) == 0)
    def _compute_ln():
        x = x_ref[...].astype(jnp.float32)
        mean = jnp.mean(x, axis=-1, keepdims=True)
        centered = x - mean
        var = jnp.mean(centered * centered, axis=-1, keepdims=True)
        y = centered * jax.lax.rsqrt(var + eps) * g_ref[...] + b_ref[...]
        y_ref[...] = y.astype(y_ref.dtype)      # bf16 cache for the MXU

    acc = jnp.dot(y_ref[...], w_ref[...], preferred_element_type=jnp.float32)
    o_ref[...] = (acc + bias_ref[...]).astype(o_ref.dtype)


def _ln_meanpool_kernel(ctx_ref, g_ref, b_ref, o_ref, acc_ref,
                        *, eps, m_valid, block_m, need_row_mask):
    """Fused LayerNorm -> sequence-mean-pool for one batch element.

    Grid = (B, M_tiles); the M axis is a reduction ("arbitrary").  acc_ref is a
    (1, Dc) f32 VMEM scratch holding the running sum of normalized rows.  The
    projection to the output dim is done OUTSIDE (one batched XLA matmul).
    """
    j = pl.program_id(1)

    @pl.when(j == 0)
    def _init():
        acc_ref[...] = jnp.zeros_like(acc_ref)

    x = ctx_ref[0].astype(jnp.float32)                          # (bm, Dc)
    mean = jnp.mean(x, axis=-1, keepdims=True)
    centered = x - mean
    var = jnp.mean(centered * centered, axis=-1, keepdims=True)
    y = centered * jax.lax.rsqrt(var + eps) * g_ref[...] + b_ref[...]

    if need_row_mask:  # trace-time: only emitted when M % block_m != 0
        # boundary-block rows beyond the true sequence length hold undefined
        # data -> zero them before the accumulate.
        row = jax.lax.broadcasted_iota(jnp.int32, y.shape, 0) + j * block_m
        y = jnp.where(row < m_valid, y, 0.0)

    acc_ref[...] += jnp.sum(y, axis=0, keepdims=True)

    @pl.when(j == pl.num_programs(1) - 1)
    def _finalize():
        o_ref[0] = (acc_ref[...] * (1.0 / m_valid)).astype(o_ref.dtype)


# ----------------------------------------------------------------------------
# wrappers
# ----------------------------------------------------------------------------
def fused_layernorm_linear(x, gamma2d, beta2d, w_bf16, bias2d, *, eps=1e-5,
                           block_rows=256, block_n=512):
    """y = LayerNorm(x) @ w + bias, fused in a single pallas_call.

    gamma2d/beta2d: (1, D) f32; w_bf16: (D, Dout) bf16; bias2d: (1, Dout) f32.
    No activation / weight padding; row remainder handled by the cdiv grid.
    """
    orig_shape = x.shape
    D = orig_shape[-1]
    Dout = w_bf16.shape[1]
    x2d = x.reshape(-1, D)
    R = x2d.shape[0]

    bm = _pick_row_block(R, block_rows)
    tn = _pick_n_block(Dout, block_n)
    n_tiles = Dout // tn

    out = pl.pallas_call(
        functools.partial(_ln_linear_kernel, eps=eps),
        out_shape=jax.ShapeDtypeStruct((R, Dout), x.dtype),
        grid=(pl.cdiv(R, bm), n_tiles),
        in_specs=[
            pl.BlockSpec((bm, D), lambda i, n: (i, 0)),
            pl.BlockSpec((1, D), lambda i, n: (0, 0)),
            pl.BlockSpec((1, D), lambda i, n: (0, 0)),
            pl.BlockSpec((D, tn), lambda i, n: (0, n)),
            pl.BlockSpec((1, tn), lambda i, n: (0, n)),
        ],
        out_specs=pl.BlockSpec((bm, tn), lambda i, n: (i, n)),
        scratch_shapes=[pltpu.VMEM((bm, D), jnp.bfloat16)],
        compiler_params=pltpu.CompilerParams(
            dimension_semantics=("parallel", "arbitrary"),
            vmem_limit_bytes=_VMEM_LIMIT),
    )(x2d, gamma2d, beta2d, w_bf16, bias2d)

    return out.reshape(orig_shape[:-1] + (Dout,))


def fused_layernorm_meanpool(ctx, gamma2d, beta2d, *, eps=1e-5, block_m=256):
    """pooled[b] = mean_over_seq(LayerNorm(ctx[b])), fused + pooled in-kernel.

    Returns (B, 1, Dc) f32; the projection to the output dim is done by the
    caller as one batched matmul.
    """
    B, M, Dc = ctx.shape
    bm = min(block_m, _round_up(M, 8))
    need_row_mask = (M % bm) != 0

    pooled = pl.pallas_call(
        functools.partial(_ln_meanpool_kernel, eps=eps, m_valid=M,
                          block_m=bm, need_row_mask=need_row_mask),
        out_shape=jax.ShapeDtypeStruct((B, 1, Dc), jnp.float32),
        grid=(B, pl.cdiv(M, bm)),
        in_specs=[
            pl.BlockSpec((1, bm, Dc), lambda b, j: (b, j, 0)),
            pl.BlockSpec((1, Dc), lambda b, j: (0, 0)),
            pl.BlockSpec((1, Dc), lambda b, j: (0, 0)),
        ],
        out_specs=pl.BlockSpec((1, 1, Dc), lambda b, j: (b, 0, 0)),
        scratch_shapes=[pltpu.VMEM((1, Dc), jnp.float32)],
        compiler_params=pltpu.CompilerParams(
            dimension_semantics=("parallel", "arbitrary"),
            vmem_limit_bytes=_VMEM_LIMIT),
    )(ctx, gamma2d, beta2d)

    return pooled


# ----------------------------------------------------------------------------
# PreNorm module (JAX / Pallas)
# ----------------------------------------------------------------------------
class PreNormPallas:
    """PreNorm(dim, fn, context_dim) with a synthetic fn =
    Linear(dim->dim)(x) + mean_over_seq(Linear(context_dim->dim)(context)).
    The LayerNorms are fused into fn's first stage (one pallas_call per path),
    preserving the forward-pass semantics LN -> fn."""

    def __init__(self, dim, context_dim=None, *, key):
        k1, k2, k3, k4, k5, k6, k7, k8 = jax.random.split(key, 8)
        # nn.LayerNorm init is weight=1, bias=0 -- perturb slightly so the
        # affine path is actually exercised (still deterministic).
        self.ln_g = jnp.ones((dim,), jnp.float32) + 0.01 * jax.random.normal(k1, (dim,))
        self.ln_b = 0.01 * jax.random.normal(k2, (dim,))
        self.context_dim = context_dim
        if context_dim is not None:
            self.lnc_g = (jnp.ones((context_dim,), jnp.float32)
                          + 0.01 * jax.random.normal(k3, (context_dim,)))
            self.lnc_b = 0.01 * jax.random.normal(k4, (context_dim,))
        # synthetic fn parameters
        self.Wx = 0.05 * jax.random.normal(k5, (dim, dim), jnp.float32)
        self.bx = 0.05 * jax.random.normal(k6, (dim,), jnp.float32)
        if context_dim is not None:
            self.Wc = 0.05 * jax.random.normal(k7, (context_dim, dim), jnp.float32)
            self.bc = 0.05 * jax.random.normal(k8, (dim,), jnp.float32)

        # --- pre-shaped / pre-cast kernel operands (done ONCE, not per call) ---
        self.ln_g2d = self.ln_g.reshape(1, dim).astype(jnp.float32)
        self.ln_b2d = self.ln_b.reshape(1, dim).astype(jnp.float32)
        self.Wx_bf16 = self.Wx.astype(jnp.bfloat16)              # MXU operand
        self.bx2d = self.bx.reshape(1, dim).astype(jnp.float32)
        if context_dim is not None:
            self.lnc_g2d = self.lnc_g.reshape(1, context_dim).astype(jnp.float32)
            self.lnc_b2d = self.lnc_b.reshape(1, context_dim).astype(jnp.float32)

    def __call__(self, x, context=None):
        # fused LN(x) -> bf16 Linear (single HBM pass over x)
        out = fused_layernorm_linear(x, self.ln_g2d, self.ln_b2d,
                                     self.Wx_bf16, self.bx2d)
        if self.context_dim is not None:
            # fused LN(context) -> mean-pool (single HBM pass over context),
            # then ONE batched (B,1,Dc)@(Dc,D) projection in XLA
            # (mean(LN(c)) @ Wc + bc == mean(LN(c) @ Wc + bc)).
            pooled = fused_layernorm_meanpool(context, self.lnc_g2d, self.lnc_b2d)
            ctx_proj = pooled @ self.Wc + self.bc                 # (B, 1, D)
            out = out + ctx_proj.astype(out.dtype)
        return out


# ----------------------------------------------------------------------------
# Main
# ----------------------------------------------------------------------------
if __name__ == "__main__":
    B, N, D = 2, 8, 32       # x: batch, seq, dim
    M, Dc = 16, 64           # context: seq, context_dim

    key = jax.random.PRNGKey(0)
    kx, kc, kmod = jax.random.split(key, 3)

    x = jax.random.normal(kx, (B, N, D), jnp.float32)
    context = jax.random.normal(kc, (B, M, Dc), jnp.float32)

    model = PreNormPallas(D, context_dim=Dc, key=kmod)
    out = model(x, context=context)
    out = jax.block_until_ready(out)

    # Reference in plain JAX (f32): LayerNorm(x) / LayerNorm(context) then fn.
    def ref_ln(v, g, b, eps=1e-5):
        mu = jnp.mean(v, axis=-1, keepdims=True)
        var = jnp.mean((v - mu) ** 2, axis=-1, keepdims=True)
        return (v - mu) * jax.lax.rsqrt(var + eps) * g + b

    xn = ref_ln(x, model.ln_g, model.ln_b)
    cn = ref_ln(context, model.lnc_g, model.lnc_b)
    ref = xn @ model.Wx + model.bx + jnp.mean(cn @ model.Wc + model.bc,
                                              axis=1, keepdims=True)

    assert out.shape == (B, N, D)
    # bf16 MXU operands in the x path -> tolerance loosened vs the f32 reference.
    assert jnp.allclose(out, ref, atol=2e-2, rtol=2e-2), "mismatch vs reference"

    print("KERNEL_OK")
</pallas_src>

<mosaic_0001>
module attributes {stable_mosaic.version = 11 : i64} {
  func.func @_ln_linear_kernel(%arg0: i32, %arg1: i32, %arg2: memref<8x32xf32, #tpu.memory_space<vmem>>, %arg3: memref<1x32xf32, #tpu.memory_space<vmem>>, %arg4: memref<1x32xf32, #tpu.memory_space<vmem>>, %arg5: memref<32x32xbf16, #tpu.memory_space<vmem>>, %arg6: memref<1x32xf32, #tpu.memory_space<vmem>>, %arg7: memref<8x32xf32, #tpu.memory_space<vmem>>, %arg8: memref<8x32xbf16, #tpu.memory_space<vmem>>) attributes {dimension_semantics = [#tpu.dimension_semantics<parallel>, #tpu.dimension_semantics<arbitrary>], iteration_bounds = array<i64: 2, 1>, scalar_prefetch = 0 : i64, scratch_operands = 1 : i64, tpu.core_type = #tpu.core_type<tc>, window_params = [{transform_indices = @transform_0, window_bounds = array<i64: 8, 32>}, {pipeline_mode = #tpu.pipeline_mode<synchronous>, transform_indices = @transform_1, window_bounds = array<i64: 1, 32>}, {pipeline_mode = #tpu.pipeline_mode<synchronous>, transform_indices = @transform_2, window_bounds = array<i64: 1, 32>}, {transform_indices = @transform_3, window_bounds = array<i64: 32, 32>}, {transform_indices = @transform_4, window_bounds = array<i64: 1, 32>}, {transform_indices = @transform_5, window_bounds = array<i64: 8, 32>}]} {
    %c0_i32 = arith.constant 0 : i32
    %0 = arith.cmpi eq, %arg1, %c0_i32 : i32
    %1 = arith.extui %0 : i1 to i32
    %c0_i32_0 = arith.constant 0 : i32
    %2 = arith.cmpi ne, %1, %c0_i32_0 : i32
    scf.if %2 {
      %c0_8 = arith.constant 0 : index
      %c0_9 = arith.constant 0 : index
      %10 = vector.load %arg2[%c0_8, %c0_9] : memref<8x32xf32, #tpu.memory_space<vmem>>, vector<8x32xf32>
      %cst_10 = arith.constant dense<0.000000e+00> : vector<8xf32>
      %11 = vector.multi_reduction <add>, %10, %cst_10 [1] : vector<8x32xf32> to vector<8xf32>
      %12 = vector.shape_cast %11 : vector<8xf32> to vector<8x1xf32>
      %cst_11 = arith.constant 3.200000e+01 : f32
      %13 = vector.broadcast %cst_11 : f32 to vector<8x1xf32>
      %14 = arith.divf %12, %13 : vector<8x1xf32>
      %15 = vector.broadcast %14 : vector<8x1xf32> to vector<8x32xf32>
      %16 = arith.subf %10, %15 : vector<8x32xf32>
      %17 = arith.mulf %16, %16 : vector<8x32xf32>
      %cst_12 = arith.constant dense<0.000000e+00> : vector<8xf32>
      %18 = vector.multi_reduction <add>, %17, %cst_12 [1] : vector<8x32xf32> to vector<8xf32>
      %19 = vector.shape_cast %18 : vector<8xf32> to vector<8x1xf32>
      %cst_13 = arith.constant 3.200000e+01 : f32
      %20 = vector.broadcast %cst_13 : f32 to vector<8x1xf32>
      %21 = arith.divf %19, %20 : vector<8x1xf32>
      %cst_14 = arith.constant 9.99999974E-6 : f32
      %22 = vector.broadcast %cst_14 : f32 to vector<8x1xf32>
      %23 = arith.addf %21, %22 : vector<8x1xf32>
      %24 = math.rsqrt %23 : vector<8x1xf32>
      %25 = vector.broadcast %24 : vector<8x1xf32> to vector<8x32xf32>
      %26 = arith.mulf %16, %25 : vector<8x32xf32>
      %c0_15 = arith.constant 0 : index
      %c0_16 = arith.constant 0 : index
      %27 = vector.load %arg3[%c0_15, %c0_16] : memref<1x32xf32, #tpu.memory_space<vmem>>, vector<1x32xf32>
      %28 = vector.broadcast %27 : vector<1x32xf32> to vector<8x32xf32>
      %29 = arith.mulf %26, %28 : vector<8x32xf32>
      %c0_17 = arith.constant 0 : index
      %c0_18 = arith.constant 0 : index
      %30 = vector.load %arg4[%c0_17, %c0_18] : memref<1x32xf32, #tpu.memory_space<vmem>>, vector<1x32xf32>
      %31 = vector.broadcast %30 : vector<1x32xf32> to vector<8x32xf32>
      %32 = arith.addf %29, %31 : vector<8x32xf32>
      %33 = arith.truncf %32 : vector<8x32xf32> to vector<8x32xbf16>
      %c0_19 = arith.constant 0 : index
      %c0_20 = arith.constant 0 : index
      %34 = vector.load %arg8[%c0_19, %c0_20] : memref<8x32xbf16, #tpu.memory_space<vmem>>, vector<8x32xbf16>
      tpu.vector_store %arg8[%c0_19, %c0_20], %33 {strides = array<i32>} : memref<8x32xbf16, #tpu.memory_space<vmem>>, vector<8x32xbf16>,
    } else {
    }
    %c0 = arith.constant 0 : index
    %c0_1 = arith.constant 0 : index
    %3 = vector.load %arg8[%c0, %c0_1] : memref<8x32xbf16, #tpu.memory_space<vmem>>, vector<8x32xbf16>
    %c0_2 = arith.constant 0 : index
    %c0_3 = arith.constant 0 : index
    %4 = vector.load %arg5[%c0_2, %c0_3] : memref<32x32xbf16, #tpu.memory_space<vmem>>, vector<32x32xbf16>
    %cst = arith.constant dense<0.000000e+00> : vector<8x32xf32>
    %5 = tpu.matmul %3, %4, %cst {dimension_numbers = #tpu.dot_dimension_numbers<[1], [0], [0], [1], [0, 0, 1, 1], [], []>} : vector<8x32xbf16>, vector<32x32xbf16>, vector<8x32xf32> -> vector<8x32xf32>
    %c0_4 = arith.constant 0 : index
    %c0_5 = arith.constant 0 : index
    %6 = vector.load %arg6[%c0_4, %c0_5] : memref<1x32xf32, #tpu.memory_space<vmem>>, vector<1x32xf32>
    %7 = vector.broadcast %6 : vector<1x32xf32> to vector<8x32xf32>
    %8 = arith.addf %5, %7 : vector<8x32xf32>
    %c0_6 = arith.constant 0 : index
    %c0_7 = arith.constant 0 : index
    %9 = vector.load %arg7[%c0_6, %c0_7] : memref<8x32xf32, #tpu.memory_space<vmem>>, vector<8x32xf32>
    tpu.vector_store %arg7[%c0_6, %c0_7], %8 {strides = array<i32>} : memref<8x32xf32, #tpu.memory_space<vmem>>, vector<8x32xf32>,
    return
  }
  func.func @transform_0(%arg0: i32, %arg1: i32) -> (i32, i32) {
    %c0_i32 = arith.constant 0 : i32
    %c0_i32_0 = arith.constant 0 : i32
    return %arg0, %c0_i32 : i32, i32
  }
  func.func @transform_1(%arg0: i32, %arg1: i32) -> (i32, i32) {
    %c0_i32 = arith.constant 0 : i32
    %c0_i32_0 = arith.constant 0 : i32
    %c0_i32_1 = arith.constant 0 : i32
    return %c0_i32, %c0_i32_0 : i32, i32
  }
  func.func @transform_2(%arg0: i32, %arg1: i32) -> (i32, i32) {
    %c0_i32 = arith.constant 0 : i32
    %c0_i32_0 = arith.constant 0 : i32
    %c0_i32_1 = arith.constant 0 : i32
    return %c0_i32, %c0_i32_0 : i32, i32
  }
  func.func @transform_3(%arg0: i32, %arg1: i32) -> (i32, i32) {
    %c0_i32 = arith.constant 0 : i32
    %c0_i32_0 = arith.constant 0 : i32
    return %c0_i32, %arg1 : i32, i32
  }
  func.func @transform_4(%arg0: i32, %arg1: i32) -> (i32, i32) {
    %c0_i32 = arith.constant 0 : i32
    %c0_i32_0 = arith.constant 0 : i32
    return %c0_i32, %arg1 : i32, i32
  }
  func.func @transform_5(%arg0: i32, %arg1: i32) -> (i32, i32) {
    %c0_i32 = arith.constant 0 : i32
    return %arg0, %arg1 : i32, i32
  }
}

</mosaic_0001>

<bundles_post_ra>
// kernel: tpu_custom_call.1
= control target key start
LH: loop header
LB: loop body
LE: loop exit
PB: predicated region body
PF: predicated region fallthrough
CT: control target
= control target key end

     0   :  { %10 = vsyncpa [#allocation4], 0  ;;  %s1045_s0 = inlined_call_operand.hbm [shape: f32[16,32], index: 0, kind: input, shape index: {}]   ;;  %s1046_s1 = inlined_call_operand.vmem [shape: f32[1,32], index: 1, kind: input, shape index: {}]   ;;  %s1047_s2 = inlined_call_operand.vmem [shape: f32[1,32], index: 2, kind: input, shape index: {}]   ;;  %s1048_s3 = inlined_call_operand.hbm [shape: bf16[32,32], index: 3, kind: input, shape index: {}]   ;;  %s1049_s4 = inlined_call_operand.vmem [shape: f32[1,32], index: 4, kind: input, shape index: {}]   ;;  %s1050_s5 = inlined_call_operand.hbm [shape: f32[16,32], index: 5, kind: output, shape index: {}]  }
   0x1   :  { %12 = vsyncpa [#allocation4 + $0x1], 0 }
   0x2   :  { %13 = vsyncpa [#allocation7], 0 }
   0x3   :  { %14 = vsyncpa [#allocation5], 0 }
   0x4   :  { %16 = vsyncpa [#allocation5 + $0x1], 0  ;;  %s814_s18 = smov 0   ;;  %s816_s19 = smov 0  }
   0x5   :  { %s818_s20 = smov 0   ;;  %s820_s21 = smov 0  }
   0x6   :  { %s822_s22 = smov 0   ;;  %s824_s23 = smov 0  }
   0x7 LB: > { %s517_s24 = sadd.s32 4294967295, %s775_s23   ;;  %s518_s25 = sadd.s32 4294967294, %s775_s23   ;;  %s775_s23 = sphi %s824_s23, %s22_s23   ;;  %s771_s22 = sphi %s822_s22, %s1074_s22   ;;  %s767_s21 = sphi %s820_s21, %s1073_s21   ;;  %s763_s20 = sphi %s818_s20, %s1072_s20   ;;  %s759_s19 = sphi %s816_s19, %s1071_s19   ;;  %s755_s18 = sphi %s814_s18, %s1070_s18  }
   0x8   : > { %p54_p0 = scmp.ne.s32.totalorder %s759_s19, %s755_s18  ;;  %p848_p1 = scmp.eq.s32.totalorder %s517_s24, 0 }
   0x9   : > { %p852_p2 = scmp.eq.s32.totalorder %s517_s24, 1  ;;  %p180_p3 = scmp.eq.s32.totalorder %s518_s25, 1 }
   0xa   : > { %s1055_s26 = scalar_select %p848_p1, 1, 0 }
   0xb   : > { %s1056_s27 = scalar_select %p852_p2, 1, 0 }
   0xc   : > { %p858_p4 = por %p848_p1, %p54_p0  ;;  %p519_p5 = scmp.ge.s32.totalorder %s775_s23, 1 }
   0xd   : > { %p863_p6 = por %p180_p3, %p54_p0  ;;  %p187_p7 = scmp.lt.s32.totalorder %s775_s23, 3 }
   0xe   : > { %s1057_s28 = scalar_select %p858_p4, 1, 0 }
   0xf   : > { %s1058_s29 = scalar_select %p863_p6, 1, 0 }
  0x10   : > { %p868_p8 = pnand %p519_p5, %p187_p7  ;;  %s777_s6 = smov [#allocation6]  }
  0x11   : > { %s207_s7 = sshll.u32 %s777_s6, 4  ;;  %s34_s9 = sadd.s32 1, %s771_s22  ;;  %s208_s7 = int_to_ptr.vmem [resolvable:$true] %s207_s7 }
  0x12   : > { %s1059_s30 = scalar_select %p868_p8, 1, 0 }
  0x13   : > { %p558_p9 = pneg %p868_p8  ;;  %s631_s12 = scalar_lea.hbm %s1048_s3, 256 }
  0x14   : > { %p632_p12 = scmp.ne.s32.totalorder %s1048_s3, %s631_s12  ;;  %p638_p5 = scmp.lt.u32.totalorder %s631_s12, %s1048_s3 }
  0x15   : > { %p877_p11 = pnand %p558_p9, %p848_p1 }
  0x17   : > { %p633_p13 = pneg %p877_p11 }
  0x19   : > { %p634_p0 = pnand %p633_p13, %p632_p12 }
  0x1b   : > { %p635_p3 = pneg %p634_p0 }
  0x1d   : > { %p640_p7 = pnand %p638_p5, %p635_p3 }
  0x1f   : > { %643 = shalt.err (!%p640_p7)
}
  0x20   : > { %s644_s17 = scalar_lea.vmem %s208_s7, 256  ;;  %p652_p1 = scmp.lt.s32.totalorder %s208_s7, %s208_s7 }
  0x21   : > { %p645_p9 = scmp.ne.s32.totalorder %s208_s7, %s644_s17  ;;  %p653_p4 = scmp.lt.s32.totalorder %s644_s17, %s644_s17 }
  0x23   : > { %p647_p10 = pnand %p645_p9, %p633_p13  ;;  %p654_p8 = por %p653_p4, %p652_p1 }
  0x25   : > { %p648_p6 = pneg %p647_p10 }
  0x27   : > { %p655_p2 = pnand %p654_p8, %p648_p6 }
  0x29   : > { %658 = shalt.err (!%p655_p2)
}
  0x2a   : > { %s778_s24 = smov 64   ;;  %s779_s25 = smov 4  }
  0x2b   : > { %561 = dma.hbm_to_vmem [thread:$0]  (!%p877_p11), %s1048_s3, 256, %s208_s7, [#allocation7], %s778_s24, %s778_s24, %s779_s25  }
  0x2c   : > { %p36_p1 = scmp.ge.s32.totalorder %s34_s9, 2  ;;  %s41_s11 = sadd.s32 1, %s763_s20 }
  0x2d   : > { %p48_p2 = scmp.ne.s32.totalorder %s763_s20, %s759_s19  ;;  %p49_p4 = scmp.eq.s32.totalorder %s775_s23, 0 }
  0x2e   : > { %s1076_s9 = smov (%p36_p1, %s34_s9), 0  ;;  %p1062_p8 = scmp.ne.s32.totalorder %s1056_s27, 0 }
  0x2f   : > { %p904_p6 = por %p49_p4, %p48_p2  ;;  %s38_s8 = ssub.s32 %s771_s22, %s1076_s9 }
  0x30   : > { %p910_p10 = por %p1062_p8, %p48_p2  ;;  %p571_p12 = scmp.lt.s32.totalorder %s775_s23, 2 }
  0x31   : > { %p39_p11 = scmp.eq.s32.totalorder %s38_s8, 0  ;;  %s227_s7 = sand.u32 1, %s763_s20  }
  0x32   : > { %s523_s14 = sshll.u32 %s227_s7, 3  ;;  %s524_s16 = sshll.u32 %s771_s22, 7 }
  0x33   : > { %s919_s15 = scalar_select %p39_p11, %s763_s20, %s41_s11  }
  0x34   : > { %s925_s25 = scalar_lea.hbm %s1045_s0, %s524_s16  ;;  %s231_s27 = scalar_lea.vmem [#allocation3], %s523_s14 }
  0x35   : > { %s238_s6 = sshll.u32 %s231_s27, 4  ;;  %p931_p13 = pnand %p571_p12, %p904_p6  ;;  %s927_s6 = int_to_ptr.vmem [resolvable:$true] %s238_s6 }
  0x36   : > { %s228_s11 = scalar_lea.sflag [#allocation4], %s227_s7  ;;  %s659_s8 = scalar_lea.hbm %s925_s25, 128 }
  0x37   : > { %p660_p0 = scmp.ne.s32.totalorder %s925_s25, %s659_s8  ;;  %p661_p3 = pneg %p931_p13 }
  0x38   : > { %s664_s17 = scalar_lea.hbm %s1045_s0, 256  ;;  %p665_p9 = scmp.lt.u32.totalorder %s925_s25, %s1045_s0 }
  0x39   : > { %p662_p5 = pnand %p661_p3, %p660_p0  ;;  %p666_p1 = scmp.lt.u32.totalorder %s664_s17, %s659_s8 }
  0x3a   : > { %p668_p4 = scmp.lt.u32.totalorder %s659_s8, %s925_s25 }
  0x3b   : > { %p663_p7 = pneg %p662_p5  ;;  %p667_p2 = por %p666_p1, %p665_p9 }
  0x3d   : > { %p669_p6 = por %p668_p4, %p667_p2 }
  0x3f   : > { %p670_p8 = pnand %p669_p6, %p663_p7 }
  0x41   : > { %673 = shalt.err (!%p670_p8)
}
  0x42   : > { %s674_s7 = scalar_lea.vmem %s927_s6, 128  ;;  %s780_s27 = smov [#allocation3]  }
  0x43   : > { %p675_p12 = scmp.ne.s32.totalorder %s927_s6, %s674_s7  ;;  %s679_s14 = sshll.u32 %s780_s27, 4  ;;  %s680_s14 = int_to_ptr.vmem [resolvable:$false] %s679_s14 }
  0x44   : > { %s681_s16 = scalar_lea.vmem %s680_s14, 256  ;;  %p682_p5 = scmp.lt.s32.totalorder %s927_s6, %s680_s14 }
  0x45   : > { %p677_p11 = pnand %p675_p12, %p661_p3  ;;  %p683_p9 = scmp.lt.s32.totalorder %s681_s16, %s674_s7 }
  0x47   : > { %p678_p0 = pneg %p677_p11  ;;  %p684_p1 = por %p683_p9, %p682_p5 }
  0x49   : > { %p685_p2 = pnand %p684_p1, %p678_p0 }
  0x4b   : > { %688 = shalt.err (!%p685_p2)
}
  0x4c   : > { %565 = dma.hbm_to_vmem [thread:$0]  (!%p931_p13), %s925_s25, 128, %s927_s6, %s228_s11  }
  0x4d   : > { %p1065_p7 = scmp.ne.s32.totalorder %s1059_s30, 0 }
  0x4e   : > { %s963_s8 = sand.u32 (!%p1065_p7), 1, %s759_s19   ;;  %p1066_p3 = scmp.ne.s32.totalorder (!%p1065_p7), %s1057_s28, 0 }
  0x4f   : > { %247 = sbr.rel (%p1065_p7) target bundleno = 642 (0x282), region = 40  ;;  %s526_s17 = sshll.u32 (!%p1065_p7), %s963_s8, 3 }
  0x50   : > { %s250_s12 = scalar_lea.sflag (!%p1065_p7), [#allocation4], %s963_s8  ;;  %s253_s24 = scalar_lea.vmem (!%p1065_p7), [#allocation3], %s526_s17 }
  0x56   : > { %742 = dma.done.wait (%p1066_p3), %s250_s12, 128  }
  0x57   : > { %744 = vsyncadd (%p1066_p3), %s250_s12, 4294967168  ;;  %p1067_p13 = scmp.ne.s32.totalorder %s1055_s26, 0 }
  0x59   : > { %746 = dma.done.wait (%p1067_p13), [#allocation7], 256  }
  0x5a   : > { %748 = vsyncadd (%p1067_p13), [#allocation7], 4294967040  ;;  %vm296_vm0 = vcmask 261120   ;;  %v295_v0 = vld [vmem:[%s253_s24] sm:$0xff]  ;;  %v627_v7 = vld [vmem:[#allocation6] sm:$0xff]   ;;  %v781_v8 = vmov 0.0  }
  0x5b   : > { %v297_v1 = vsel %vm296_vm0, %v295_v0, 0.0  ;;  %542 = vmatprep.subr.bf16.mxu0 %v781_v8  ;;  %v628_v9 = vld [vmem:[#allocation6 + $0x8] sm:$0xff]   ;;  %vm782_vm1 = vmmov 0   ;;  %vm328_vm2 = vcmask 257024   ;;  %s536_s11 = sshll.u32 %s767_s21, 7  ;;  %s286_s7 = scalar_lea.vmem [#allocation8], %s526_s17 }
  0x5c   : > { %298 = vadd.xlane.f32.xlu0 %v297_v1  ;;  %543 = vmatpush3.bf16.msra.mxu0 %v627_v7  ;;  %v529_v14 = vld [vmem:[%s1046_s1] ss:$0 sm:$0xff]  ;;  %s414_s27 = sshll.u32 %s286_s7, 4  ;;  %s995_s12 = scalar_lea.hbm %s1050_s5, %s536_s11  ;;  %s997_s27 = int_to_ptr.vmem [resolvable:$true] %s414_s27 }
  0x5d   : > { %546 = vmatprep.mubr.msk.bf16.mxu0 %vm782_vm1, %v781_v8  ;;  %544 = vmatprep.subr.bf16.mxu0 %v781_v8  ;;  %v530_v16 = vld [vmem:[%s1047_s2] ss:$0 sm:$0xff]  ;;  %s400_s21 = scalar_lea.sflag [#allocation5], %s963_s8  ;;  %s689_s17 = scalar_lea.vmem %s997_s27, 128 }
  0x5e   : > { %v531_v21 = vld [vmem:[%s1049_s4] ss:$0 sm:$0xff]  ;;  %p690_p4 = scmp.ne.s32.totalorder %s997_s27, %s689_s17  ;;  %s783_s24 = smov [#allocation8]  }
  0x5f   : > { %s693_s26 = sshll.u32 %s783_s24, 4  ;;  %s694_s26 = int_to_ptr.vmem [resolvable:$false] %s693_s26 }
  0x60   : > { %545 = vmatpush3.bf16.msra.mxu0 %v628_v9  ;;  %p691_p6 = pnand %p690_p4, %p910_p10  ;;  %s695_s28 = scalar_lea.vmem %s694_s26, 256 }
  0x61   : > { %p696_p12 = scmp.lt.s32.totalorder %s997_s27, %s694_s26  ;;  %p697_p11 = scmp.lt.s32.totalorder %s695_s28, %s689_s17 }
  0x62   : > { %p692_p8 = pneg %p691_p6 }
  0x63   : > { %p698_p0 = por %p697_p11, %p696_p12 }
  0x65   : > { %p699_p5 = pnand %p698_p0, %p692_p8 }
  0xe9   : > { %v299_v2 = vpop.xlane.xlu0 %298 }
  0xea   : > { %v301_v3 = vmul.f32 0.03125, %v299_v2 }
  0xec   : > { %v302_v4 = vsub.f32 %v295_v0, %v301_v3 }
  0xee   : > { %v303_v5 = vmul.f32 %v302_v4, %v302_v4 }
  0xf0   : > { %v304_v6 = vsel %vm296_vm0, %v303_v5, 0.0 }
  0xf1   : > { %305 = vadd.xlane.f32.xlu0 %v304_v6 }
 0x17e   : > { %v306_v10 = vpop.xlane.xlu0 %305 }
 0x17f   : > { %v307_v11 = vmul.f32 0.03125, %v306_v10 }
 0x181   : > { %v308_v12 = vadd.f32 1e-05, %v307_v11 }
 0x183   : > { %629 = vrsqrt.f32 %v308_v12 }
 0x18d   : > { %v630_v13 = vpop.eup %629 }
 0x18e   : > { %v310_v15 = vmul.f32 %v630_v13, %v302_v4 }
 0x190   : > { %v318_v17 = vmul.f32 %v529_v14, %v310_v15 }
 0x192   : > { %v326_v18 = vadd.f32 %v530_v16, %v318_v17 }
 0x194   : > { %v327_v19 = vpack.c.bf16 %v326_v18, %v326_v18 }
 0x196   : > { %329 = vst.msk [vmem:[#allocation2] sm:$0xf] %vm328_vm2, %v327_v19 }
 0x19d   : > { %v330_v20 = vld [vmem:[#allocation2] sm:$0xf] }
 0x19e   : > { %547 = vmatmul.mubr.msk.bf16.vlgmr.msra.gmra.mrb[0].mxu0 %vm296_vm0, %v330_v20 }
 0x271   : > { %v392_v22 = vpop.f32.mrb[0].mxu0 }
 0x272   : > { %v393_v23 = vadd.f32 %v531_v21, %v392_v22  ;;  %v548_v24 = vpop.f32.mrb[1].mxu0 }
 0x273   : > { %v395_v25 = vpop.f32.mrb[2].mxu0 }
 0x274   : > { %v549_v26 = vpop.f32.mrb[3].mxu0  ;;  %398 = vst.msk [vmem:[%s286_s7] sm:$0xff] %vm296_vm0, %v393_v23 }
 0x275   : > { %702 = shalt.err (!%p699_p5)
}
 0x276   : > { %s703_s8 = scalar_lea.hbm %s995_s12, 128  ;;  %s707_s6 = scalar_lea.hbm %s1050_s5, 256 }
 0x277   : > { %p704_p9 = scmp.ne.s32.totalorder %s995_s12, %s703_s8  ;;  %p708_p7 = scmp.lt.u32.totalorder %s995_s12, %s1050_s5 }
 0x278   : > { %p709_p3 = scmp.lt.u32.totalorder %s707_s6, %s703_s8  ;;  %p711_p4 = scmp.lt.u32.totalorder %s703_s8, %s995_s12 }
 0x279   : > { %p705_p1 = pnand %p704_p9, %p910_p10 }
 0x27a   : > { %p710_p13 = por %p709_p3, %p708_p7 }
 0x27b   : > { %p706_p2 = pneg %p705_p1 }
 0x27c   : > { %p712_p6 = por %p711_p4, %p710_p13 }
 0x27e   : > { %p713_p8 = pnand %p712_p6, %p706_p2 }
 0x280   : > { %716 = shalt.err (!%p713_p8)
}
 0x281   : > { %556 = dma.vmem_to_hbm [thread:$0]  (%p910_p10), %s997_s27, 128, %s995_s12, %s400_s21  }
 0x282 PF: > { %s426_s7 = sand.u32 1, %s755_s18   ;;  %p1068_p12 = scmp.ne.s32.totalorder %s1058_s29, 0 }
 0x283   : > { %p1069_p11 = scmp.ge.s32.totalorder %s775_s23, 2  ;;  %s427_s14 = scalar_lea.sflag [#allocation5], %s426_s7 }
 0x285   : > { %p567_p0 = pnand %p1069_p11, %p1068_p12 }
 0x287   : > { %750 = dma.done.wait (!%p567_p0), %s427_s14, 128  }
 0x288   : > { %752 = vsyncadd (!%p567_p0), %s427_s14, 4294967168  ;;  %s22_s23 = sadd.s32 1, %s775_s23   ;;  %s1070_s18 = smov %s759_s19 }
 0x289   : > { %p19_p5 = scmp.ge.s32.totalorder %s22_s23, 4   ;;  %s1071_s19 = smov %s763_s20 }
 0x28a   : > { %s1072_s20 = smov %s919_s15  ;;  %s1073_s21 = smov %s771_s22 }
 0x28b   : > { %s1074_s22 = smov %s1076_s9  ;;  %21 = sbr.rel (!%p19_p5) target bundleno = 7 (0x7), region = 97 }
 0x292   :  { %432 = vsyncpa [#allocation4], 1 }
 0x293   :  { %434 = vsyncpa [#allocation4 + $0x1], 1 }
 0x294   :  { %435 = vsyncpa [#allocation7], 1 }
 0x295   :  { %436 = vsyncpa [#allocation5], 1 }
 0x296   :  { %438 = vsyncpa [#allocation5 + $0x1], 1 }

</bundles_post_ra>
